<compile_context>
chip_gen: v7x
topology: tpu7x:2x2x1
jax: 0.10.0
libtpu: 0.0.40
codegen_flags: <defaults>
</compile_context>

<pallas_src>
import jax
import jax.numpy as jnp
import numpy as np
from jax.experimental import pallas as pl
from jax.experimental.pallas import tpu as pltpu

POOL = 4  # MaxPool2d(4, 4)


def _make_kernel(N, H, W, KH, KW, OH, OW, Cout):
    L = Cout * N * OW        # packed lane width: lane = f*(N*OW) + n*OW + ow

    def kernel(w_ref, x_ref, conv_ref, pool_ref):
        # w_ref : (KH*KW, L)  pre-broadcast weight rows (VMEM)
        # x_ref : (N, H, W)   both batch images (VMEM)
        wmat = w_ref[...]                                # (KH*KW, L)
        xall = x_ref[...]                                # (N, H, W)

        # ---- valid cross-correlation, all channels & batches at once ----
        acc = jnp.zeros((OH, L), jnp.float32)
        for dx in range(KW):
            # column-shifted slab, built once per dx, reused for all dy
            cols = [xall[n, :, dx:dx + OW] for n in range(N)]            # (H, OW) each
            pair = cols[0] if N == 1 else jnp.concatenate(cols, axis=1)  # (H, N*OW)
            tiled = jnp.tile(pair, (1, Cout))                            # (H, L)
            for dy in range(KH):
                t = dy * KW + dx
                acc = acc + tiled[dy:dy + OH, :] * wmat[t:t + 1, :]
        conv_ref[...] = acc.astype(conv_ref.dtype)

        # ---- ReLU + MaxPool2d(4,4) window max via XLU rolls (no MXU) ----
        act = jnp.maximum(acc, 0.0)
        m = act
        for i in range(1, POOL):                          # row (sublane) window max
            m = jnp.maximum(m, pltpu.roll(act, shift=OH - i, axis=0))
        m2 = m
        for k in range(1, POOL):                          # col (lane) window max
            m2 = jnp.maximum(m2, pltpu.roll(m, shift=L - k, axis=1))
        # Circular wrap only contaminates window starts that are never picked
        # (picks are at multiples of POOL; needs OH % POOL == OW % POOL == 0).
        pool_ref[...] = m2.astype(pool_ref.dtype)         # full 128-lane dense store

    return kernel


def net_forward(x, weight):
    N, Cin, H, W = x.shape
    Cout, Cin_w, KH, KW = weight.shape
    assert Cin == 1 and Cin_w == 1, "module is nn.Conv2d(1, Cout, ...)"
    OH, OW = H - KH + 1, W - KW + 1
    PH, PW = OH // POOL, OW // POOL
    # The roll-based window max relies on pool-aligned output extents; fail
    # loudly on shape changes instead of silently producing wrong pooling.
    assert OH % POOL == 0 and OW % POOL == 0, "roll-pool needs OH, OW divisible by 4"
    L = Cout * N * OW

    kernel = _make_kernel(N, H, W, KH, KW, OH, OW, Cout)

    # Pre-broadcast weights: row t = dy*KW + dx holds w[f, 0, dy, dx] replicated
    # across that channel's N*OW lanes -> (KH*KW, L). Batch-independent, tiny.
    w_rows = jnp.repeat(
        weight.astype(jnp.float32).reshape(Cout, KH * KW).T, N * OW, axis=1)

    conv_slab, pool_slab = pl.pallas_call(
        kernel,
        out_shape=(
            jax.ShapeDtypeStruct((OH, L), jnp.float32),   # lane-packed conv
            jax.ShapeDtypeStruct((OH, L), jnp.float32),   # window-max slab
        ),
        in_specs=[
            pl.BlockSpec(memory_space=pltpu.MemorySpace.VMEM),  # w_rows
            pl.BlockSpec(memory_space=pltpu.MemorySpace.VMEM),  # x (N,H,W)
        ],
        out_specs=(
            pl.BlockSpec(memory_space=pltpu.MemorySpace.VMEM),
            pl.BlockSpec(memory_space=pltpu.MemorySpace.VMEM),
        ),
    )(w_rows, x.reshape(N, H, W).astype(jnp.float32))

    # Unpack lane layout [f][n][ow] back to NCHW (cheap wrapper-side XLA).
    conv_x = conv_slab.reshape(OH, Cout, N, OW).transpose(2, 1, 0, 3)
    act_x = jnp.maximum(conv_x, 0.0)       # ReLU redone in wrapper by design
    pool_x = (pool_slab.reshape(OH, Cout, N, OW)
              [0:PH * POOL:POOL, :, :, 0:PW * POOL:POOL]
              .transpose(2, 1, 0, 3))      # stride-4 row/col picks in wrapper
    return conv_x, act_x, pool_x


if __name__ == "__main__":
    key = jax.random.PRNGKey(0)
    kx, kw = jax.random.split(key)
    # N=2, C_in=1, H=W=19 -> conv 16x16 -> pool 4x4
    x = jax.random.normal(kx, (2, 1, 19, 19), dtype=jnp.float32)
    weight = jax.random.normal(kw, (4, 1, 4, 4), dtype=jnp.float32)

    conv_x, act_x, pool_x = jax.block_until_ready(net_forward(x, weight))

    # Pure-JAX reference for sanity checking.
    conv_ref = jax.lax.conv_general_dilated(
        x, weight, (1, 1), "VALID", dimension_numbers=("NCHW", "OIHW", "NCHW"))
    act_ref = jnp.maximum(conv_ref, 0.0)
    pool_ref = jax.lax.reduce_window(
        act_ref, -jnp.inf, jax.lax.max, (1, 1, POOL, POOL), (1, 1, POOL, POOL), "VALID")

    np.testing.assert_allclose(np.asarray(conv_x), np.asarray(conv_ref), rtol=1e-5, atol=1e-5)
    np.testing.assert_allclose(np.asarray(act_x), np.asarray(act_ref), rtol=1e-5, atol=1e-5)
    np.testing.assert_allclose(np.asarray(pool_x), np.asarray(pool_ref), rtol=1e-5, atol=1e-5)
    print("KERNEL_OK")
</pallas_src>

<mosaic_0001>
module attributes {stable_mosaic.version = 11 : i64} {
  func.func @kernel(%arg0: memref<16x128xf32, #tpu.memory_space<vmem>>, %arg1: memref<2x19x19xf32, #tpu.memory_space<vmem>>, %arg2: memref<16x128xf32, #tpu.memory_space<vmem>>, %arg3: memref<16x128xf32, #tpu.memory_space<vmem>>) attributes {dimension_semantics = [], scalar_prefetch = 0 : i64, scratch_operands = 0 : i64, tpu.core_type = #tpu.core_type<tc>} {
    %c0 = arith.constant 0 : index
    %c0_0 = arith.constant 0 : index
    %0 = vector.load %arg0[%c0, %c0_0] : memref<16x128xf32, #tpu.memory_space<vmem>>, vector<16x128xf32>
    %c0_1 = arith.constant 0 : index
    %c0_2 = arith.constant 0 : index
    %c0_3 = arith.constant 0 : index
    %1 = vector.load %arg1[%c0_1, %c0_2, %c0_3] : memref<2x19x19xf32, #tpu.memory_space<vmem>>, vector<2x19x19xf32>
    %cst = arith.constant 0.000000e+00 : f32
    %2 = vector.broadcast %cst : f32 to vector<16x128xf32>
    %3 = vector.extract_strided_slice %1 {offsets = [0, 0, 0], sizes = [1, 19, 16], strides = [1, 1, 1]} : vector<2x19x19xf32> to vector<1x19x16xf32>
    %4 = vector.shape_cast %3 : vector<1x19x16xf32> to vector<19x16xf32>
    %5 = vector.extract_strided_slice %1 {offsets = [1, 0, 0], sizes = [1, 19, 16], strides = [1, 1, 1]} : vector<2x19x19xf32> to vector<1x19x16xf32>
    %6 = vector.shape_cast %5 : vector<1x19x16xf32> to vector<19x16xf32>
    %7 = tpu.concatenate %4, %6 in 1 : vector<19x16xf32>, vector<19x16xf32> -> vector<19x32xf32>
    %8 = tpu.concatenate %7, %7, %7, %7 in 1 : vector<19x32xf32>, vector<19x32xf32>, vector<19x32xf32>, vector<19x32xf32> -> vector<19x128xf32>
    %9 = vector.extract_strided_slice %8 {offsets = [0, 0], sizes = [16, 128], strides = [1, 1]} : vector<19x128xf32> to vector<16x128xf32>
    %10 = vector.extract_strided_slice %0 {offsets = [0, 0], sizes = [1, 128], strides = [1, 1]} : vector<16x128xf32> to vector<1x128xf32>
    %11 = vector.broadcast %10 : vector<1x128xf32> to vector<16x128xf32>
    %12 = arith.mulf %9, %11 : vector<16x128xf32>
    %13 = arith.addf %2, %12 : vector<16x128xf32>
    %14 = vector.extract_strided_slice %8 {offsets = [1, 0], sizes = [16, 128], strides = [1, 1]} : vector<19x128xf32> to vector<16x128xf32>
    %15 = vector.extract_strided_slice %0 {offsets = [4, 0], sizes = [1, 128], strides = [1, 1]} : vector<16x128xf32> to vector<1x128xf32>
    %16 = vector.broadcast %15 : vector<1x128xf32> to vector<16x128xf32>
    %17 = arith.mulf %14, %16 : vector<16x128xf32>
    %18 = arith.addf %13, %17 : vector<16x128xf32>
    %19 = vector.extract_strided_slice %8 {offsets = [2, 0], sizes = [16, 128], strides = [1, 1]} : vector<19x128xf32> to vector<16x128xf32>
    %20 = vector.extract_strided_slice %0 {offsets = [8, 0], sizes = [1, 128], strides = [1, 1]} : vector<16x128xf32> to vector<1x128xf32>
    %21 = vector.broadcast %20 : vector<1x128xf32> to vector<16x128xf32>
    %22 = arith.mulf %19, %21 : vector<16x128xf32>
    %23 = arith.addf %18, %22 : vector<16x128xf32>
    %24 = vector.extract_strided_slice %8 {offsets = [3, 0], sizes = [16, 128], strides = [1, 1]} : vector<19x128xf32> to vector<16x128xf32>
    %25 = vector.extract_strided_slice %0 {offsets = [12, 0], sizes = [1, 128], strides = [1, 1]} : vector<16x128xf32> to vector<1x128xf32>
    %26 = vector.broadcast %25 : vector<1x128xf32> to vector<16x128xf32>
    %27 = arith.mulf %24, %26 : vector<16x128xf32>
    %28 = arith.addf %23, %27 : vector<16x128xf32>
    %29 = vector.extract_strided_slice %1 {offsets = [0, 0, 1], sizes = [1, 19, 16], strides = [1, 1, 1]} : vector<2x19x19xf32> to vector<1x19x16xf32>
    %30 = vector.shape_cast %29 : vector<1x19x16xf32> to vector<19x16xf32>
    %31 = vector.extract_strided_slice %1 {offsets = [1, 0, 1], sizes = [1, 19, 16], strides = [1, 1, 1]} : vector<2x19x19xf32> to vector<1x19x16xf32>
    %32 = vector.shape_cast %31 : vector<1x19x16xf32> to vector<19x16xf32>
    %33 = tpu.concatenate %30, %32 in 1 : vector<19x16xf32>, vector<19x16xf32> -> vector<19x32xf32>
    %34 = tpu.concatenate %33, %33, %33, %33 in 1 : vector<19x32xf32>, vector<19x32xf32>, vector<19x32xf32>, vector<19x32xf32> -> vector<19x128xf32>
    %35 = vector.extract_strided_slice %34 {offsets = [0, 0], sizes = [16, 128], strides = [1, 1]} : vector<19x128xf32> to vector<16x128xf32>
    %36 = vector.extract_strided_slice %0 {offsets = [1, 0], sizes = [1, 128], strides = [1, 1]} : vector<16x128xf32> to vector<1x128xf32>
    %37 = vector.broadcast %36 : vector<1x128xf32> to vector<16x128xf32>
    %38 = arith.mulf %35, %37 : vector<16x128xf32>
    %39 = arith.addf %28, %38 : vector<16x128xf32>
    %40 = vector.extract_strided_slice %34 {offsets = [1, 0], sizes = [16, 128], strides = [1, 1]} : vector<19x128xf32> to vector<16x128xf32>
    %41 = vector.extract_strided_slice %0 {offsets = [5, 0], sizes = [1, 128], strides = [1, 1]} : vector<16x128xf32> to vector<1x128xf32>
    %42 = vector.broadcast %41 : vector<1x128xf32> to vector<16x128xf32>
    %43 = arith.mulf %40, %42 : vector<16x128xf32>
    %44 = arith.addf %39, %43 : vector<16x128xf32>
    %45 = vector.extract_strided_slice %34 {offsets = [2, 0], sizes = [16, 128], strides = [1, 1]} : vector<19x128xf32> to vector<16x128xf32>
    %46 = vector.extract_strided_slice %0 {offsets = [9, 0], sizes = [1, 128], strides = [1, 1]} : vector<16x128xf32> to vector<1x128xf32>
    %47 = vector.broadcast %46 : vector<1x128xf32> to vector<16x128xf32>
    %48 = arith.mulf %45, %47 : vector<16x128xf32>
    %49 = arith.addf %44, %48 : vector<16x128xf32>
    %50 = vector.extract_strided_slice %34 {offsets = [3, 0], sizes = [16, 128], strides = [1, 1]} : vector<19x128xf32> to vector<16x128xf32>
    %51 = vector.extract_strided_slice %0 {offsets = [13, 0], sizes = [1, 128], strides = [1, 1]} : vector<16x128xf32> to vector<1x128xf32>
    %52 = vector.broadcast %51 : vector<1x128xf32> to vector<16x128xf32>
    %53 = arith.mulf %50, %52 : vector<16x128xf32>
    %54 = arith.addf %49, %53 : vector<16x128xf32>
    %55 = vector.extract_strided_slice %1 {offsets = [0, 0, 2], sizes = [1, 19, 16], strides = [1, 1, 1]} : vector<2x19x19xf32> to vector<1x19x16xf32>
    %56 = vector.shape_cast %55 : vector<1x19x16xf32> to vector<19x16xf32>
    %57 = vector.extract_strided_slice %1 {offsets = [1, 0, 2], sizes = [1, 19, 16], strides = [1, 1, 1]} : vector<2x19x19xf32> to vector<1x19x16xf32>
    %58 = vector.shape_cast %57 : vector<1x19x16xf32> to vector<19x16xf32>
    %59 = tpu.concatenate %56, %58 in 1 : vector<19x16xf32>, vector<19x16xf32> -> vector<19x32xf32>
    %60 = tpu.concatenate %59, %59, %59, %59 in 1 : vector<19x32xf32>, vector<19x32xf32>, vector<19x32xf32>, vector<19x32xf32> -> vector<19x128xf32>
    %61 = vector.extract_strided_slice %60 {offsets = [0, 0], sizes = [16, 128], strides = [1, 1]} : vector<19x128xf32> to vector<16x128xf32>
    %62 = vector.extract_strided_slice %0 {offsets = [2, 0], sizes = [1, 128], strides = [1, 1]} : vector<16x128xf32> to vector<1x128xf32>
    %63 = vector.broadcast %62 : vector<1x128xf32> to vector<16x128xf32>
    %64 = arith.mulf %61, %63 : vector<16x128xf32>
    %65 = arith.addf %54, %64 : vector<16x128xf32>
    %66 = vector.extract_strided_slice %60 {offsets = [1, 0], sizes = [16, 128], strides = [1, 1]} : vector<19x128xf32> to vector<16x128xf32>
    %67 = vector.extract_strided_slice %0 {offsets = [6, 0], sizes = [1, 128], strides = [1, 1]} : vector<16x128xf32> to vector<1x128xf32>
    %68 = vector.broadcast %67 : vector<1x128xf32> to vector<16x128xf32>
    %69 = arith.mulf %66, %68 : vector<16x128xf32>
    %70 = arith.addf %65, %69 : vector<16x128xf32>
    %71 = vector.extract_strided_slice %60 {offsets = [2, 0], sizes = [16, 128], strides = [1, 1]} : vector<19x128xf32> to vector<16x128xf32>
    %72 = vector.extract_strided_slice %0 {offsets = [10, 0], sizes = [1, 128], strides = [1, 1]} : vector<16x128xf32> to vector<1x128xf32>
    %73 = vector.broadcast %72 : vector<1x128xf32> to vector<16x128xf32>
    %74 = arith.mulf %71, %73 : vector<16x128xf32>
    %75 = arith.addf %70, %74 : vector<16x128xf32>
    %76 = vector.extract_strided_slice %60 {offsets = [3, 0], sizes = [16, 128], strides = [1, 1]} : vector<19x128xf32> to vector<16x128xf32>
    %77 = vector.extract_strided_slice %0 {offsets = [14, 0], sizes = [1, 128], strides = [1, 1]} : vector<16x128xf32> to vector<1x128xf32>
    %78 = vector.broadcast %77 : vector<1x128xf32> to vector<16x128xf32>
    %79 = arith.mulf %76, %78 : vector<16x128xf32>
    %80 = arith.addf %75, %79 : vector<16x128xf32>
    %81 = vector.extract_strided_slice %1 {offsets = [0, 0, 3], sizes = [1, 19, 16], strides = [1, 1, 1]} : vector<2x19x19xf32> to vector<1x19x16xf32>
    %82 = vector.shape_cast %81 : vector<1x19x16xf32> to vector<19x16xf32>
    %83 = vector.extract_strided_slice %1 {offsets = [1, 0, 3], sizes = [1, 19, 16], strides = [1, 1, 1]} : vector<2x19x19xf32> to vector<1x19x16xf32>
    %84 = vector.shape_cast %83 : vector<1x19x16xf32> to vector<19x16xf32>
    %85 = tpu.concatenate %82, %84 in 1 : vector<19x16xf32>, vector<19x16xf32> -> vector<19x32xf32>
    %86 = tpu.concatenate %85, %85, %85, %85 in 1 : vector<19x32xf32>, vector<19x32xf32>, vector<19x32xf32>, vector<19x32xf32> -> vector<19x128xf32>
    %87 = vector.extract_strided_slice %86 {offsets = [0, 0], sizes = [16, 128], strides = [1, 1]} : vector<19x128xf32> to vector<16x128xf32>
    %88 = vector.extract_strided_slice %0 {offsets = [3, 0], sizes = [1, 128], strides = [1, 1]} : vector<16x128xf32> to vector<1x128xf32>
    %89 = vector.broadcast %88 : vector<1x128xf32> to vector<16x128xf32>
    %90 = arith.mulf %87, %89 : vector<16x128xf32>
    %91 = arith.addf %80, %90 : vector<16x128xf32>
    %92 = vector.extract_strided_slice %86 {offsets = [1, 0], sizes = [16, 128], strides = [1, 1]} : vector<19x128xf32> to vector<16x128xf32>
    %93 = vector.extract_strided_slice %0 {offsets = [7, 0], sizes = [1, 128], strides = [1, 1]} : vector<16x128xf32> to vector<1x128xf32>
    %94 = vector.broadcast %93 : vector<1x128xf32> to vector<16x128xf32>
    %95 = arith.mulf %92, %94 : vector<16x128xf32>
    %96 = arith.addf %91, %95 : vector<16x128xf32>
    %97 = vector.extract_strided_slice %86 {offsets = [2, 0], sizes = [16, 128], strides = [1, 1]} : vector<19x128xf32> to vector<16x128xf32>
    %98 = vector.extract_strided_slice %0 {offsets = [11, 0], sizes = [1, 128], strides = [1, 1]} : vector<16x128xf32> to vector<1x128xf32>
    %99 = vector.broadcast %98 : vector<1x128xf32> to vector<16x128xf32>
    %100 = arith.mulf %97, %99 : vector<16x128xf32>
    %101 = arith.addf %96, %100 : vector<16x128xf32>
    %102 = vector.extract_strided_slice %86 {offsets = [3, 0], sizes = [16, 128], strides = [1, 1]} : vector<19x128xf32> to vector<16x128xf32>
    %103 = vector.extract_strided_slice %0 {offsets = [15, 0], sizes = [1, 128], strides = [1, 1]} : vector<16x128xf32> to vector<1x128xf32>
    %104 = vector.broadcast %103 : vector<1x128xf32> to vector<16x128xf32>
    %105 = arith.mulf %102, %104 : vector<16x128xf32>
    %106 = arith.addf %101, %105 : vector<16x128xf32>
    %c0_4 = arith.constant 0 : index
    %c0_5 = arith.constant 0 : index
    %107 = vector.load %arg2[%c0_4, %c0_5] : memref<16x128xf32, #tpu.memory_space<vmem>>, vector<16x128xf32>
    tpu.vector_store %arg2[%c0_4, %c0_5], %106 {strides = array<i32>} : memref<16x128xf32, #tpu.memory_space<vmem>>, vector<16x128xf32>,
    %cst_6 = arith.constant 0.000000e+00 : f32
    %108 = vector.broadcast %cst_6 : f32 to vector<16x128xf32>
    %109 = arith.maximumf %106, %108 : vector<16x128xf32>
    %c15_i32 = arith.constant 15 : i32
    %110 = tpu.dynamic_rotate %109 by %c15_i32 dim 0 : vector<16x128xf32>, i32 -> vector<16x128xf32>
    %111 = arith.maximumf %109, %110 : vector<16x128xf32>
    %c14_i32 = arith.constant 14 : i32
    %112 = tpu.dynamic_rotate %109 by %c14_i32 dim 0 : vector<16x128xf32>, i32 -> vector<16x128xf32>
    %113 = arith.maximumf %111, %112 : vector<16x128xf32>
    %c13_i32 = arith.constant 13 : i32
    %114 = tpu.dynamic_rotate %109 by %c13_i32 dim 0 : vector<16x128xf32>, i32 -> vector<16x128xf32>
    %115 = arith.maximumf %113, %114 : vector<16x128xf32>
    %c127_i32 = arith.constant 127 : i32
    %116 = tpu.dynamic_rotate %115 by %c127_i32 dim 1 : vector<16x128xf32>, i32 -> vector<16x128xf32>
    %117 = arith.maximumf %115, %116 : vector<16x128xf32>
    %c126_i32 = arith.constant 126 : i32
    %118 = tpu.dynamic_rotate %115 by %c126_i32 dim 1 : vector<16x128xf32>, i32 -> vector<16x128xf32>
    %119 = arith.maximumf %117, %118 : vector<16x128xf32>
    %c125_i32 = arith.constant 125 : i32
    %120 = tpu.dynamic_rotate %115 by %c125_i32 dim 1 : vector<16x128xf32>, i32 -> vector<16x128xf32>
    %121 = arith.maximumf %119, %120 : vector<16x128xf32>
    %c0_7 = arith.constant 0 : index
    %c0_8 = arith.constant 0 : index
    %122 = vector.load %arg3[%c0_7, %c0_8] : memref<16x128xf32, #tpu.memory_space<vmem>>, vector<16x128xf32>
    tpu.vector_store %arg3[%c0_7, %c0_8], %121 {strides = array<i32>} : memref<16x128xf32, #tpu.memory_space<vmem>>, vector<16x128xf32>,
    return
  }
}

</mosaic_0001>

<bundles_post_ra>
// kernel: tpu_custom_call.1
= control target key start
LH: loop header
LB: loop body
LE: loop exit
PB: predicated region body
PF: predicated region fallthrough
CT: control target
= control target key end

     0   :  { %9 = vsyncpa [#allocation3], 0  ;;  %s668_s16 = smov 16   ;;  %s984_s0 = inlined_call_operand.vmem [shape: f32[16,128], index: 0, kind: input, shape index: {}]   ;;  %s985_s1 = inlined_call_operand.vmem [shape: f32[2,19,19], index: 1, kind: input, shape index: {}]   ;;  %s986_s2 = inlined_call_operand.hbm [shape: f32[16,128], index: 2, kind: output, shape index: {0}]   ;;  %s987_s3 = inlined_call_operand.hbm [shape: f32[16,128], index: 3, kind: output, shape index: {1}]  }
   0x1   :  { %v20_v0 = vld [vmem:[%s985_s1 + $0x18] sm:$0xff]  ;;  %v22_v1 = vld [vmem:[%s985_s1 + $0x28] sm:$0x7]  ;;  %v21_v2 = vld [vmem:[%s985_s1 + $0x20] sm:$0xff] }
   0x2   :  { %26 = vrot.lane.b32.xlu0 %v20_v0, %s668_s16  ;;  %30 = vrot.lane.b32.xlu1 %v22_v1, %s668_s16  ;;  %v17_v3 = vld [vmem:[%s985_s1] sm:$0xff] }
   0x3   :  { %10 = vsyncpa [#allocation5], 0  ;;  %s669_s21 = smov 127   ;;  %v18_v4 = vld [vmem:[%s985_s1 + $0x8] sm:$0xff]  ;;  %v19_v5 = vld [vmem:[%s985_s1 + $0x10] sm:$0x7]  ;;  %v81_v44 = vlaneseq }
   0x4   :  { %s670_s26 = smov 15   ;;  %s671_s27 = smov 126   ;;  %vm35_vm0 = vcmask 130048   ;;  %vm73_vm1 = vcmask 523264   ;;  %vm69_vm2 = vcmask 261120   ;;  %v845_v52 = vld [vmem:[%s984_s0] sm:$0xff] }
   0x5   :  { %s672_s28 = smov 14   ;;  %s673_s1 = smov 125   ;;  %v837_v47 = vshrl.u32 %v81_v44, 7  ;;  %vm77_vm3 = vcmask 785408   ;;  %vm99_vm4 = vcmask 1046528   ;;  %vm119_vm5 = vcmask 1045504  }
   0x6   :  { %28 = vrot.lane.b32.xlu0 %v21_v2, %s668_s16  ;;  %152 = vrot.lane.b32.xlu1 %v17_v3, %s669_s21  ;;  %s674_s29 = smov 13   ;;  %s675_s30 = smov 32   ;;  %vm139_vm6 = vcmask 1044480  }
   0x7   :  { %s676_s4 = smov 64   ;;  %s677_s5 = smov 96   ;;  %v91_v50 = vsub.s32 4, %v837_v47  ;;  %vm535_vm7 = vcmp.lt.s32.totalorder %v837_v47, 7  ;;  %vm542_vm8 = vcmp.lt.s32.totalorder %v837_v47, 6  ;;  %vm549_vm9 = vcmp.lt.s32.totalorder %v837_v47, 5 }
   0x9   :  { %v92_v59 = vrot.slane %v845_v52, %v91_v50 }
   0xa   :  { %154 = vrot.lane.b32.xlu0 %v18_v4, %s669_s21  ;;  %156 = vrot.lane.b32.xlu1 %v19_v5, %s669_s21 }
   0xe   :  { %161 = vrot.lane.b32.xlu0 %v20_v0, %s670_s26  ;;  %163 = vrot.lane.b32.xlu1 %v21_v2, %s670_s26 }
  0x12   :  { %165 = vrot.lane.b32.xlu0 %v22_v1, %s670_s26  ;;  %277 = vrot.lane.b32.xlu1 %v17_v3, %s671_s27 }
  0x16   :  { %279 = vrot.lane.b32.xlu0 %v18_v4, %s671_s27  ;;  %281 = vrot.lane.b32.xlu1 %v19_v5, %s671_s27 }
  0x1a   :  { %286 = vrot.lane.b32.xlu0 %v20_v0, %s672_s28  ;;  %288 = vrot.lane.b32.xlu1 %v21_v2, %s672_s28 }
  0x1e   :  { %290 = vrot.lane.b32.xlu0 %v22_v1, %s672_s28  ;;  %402 = vrot.lane.b32.xlu1 %v17_v3, %s673_s1 }
  0x22   :  { %404 = vrot.lane.b32.xlu0 %v18_v4, %s673_s1  ;;  %406 = vrot.lane.b32.xlu1 %v19_v5, %s673_s1 }
  0x26   :  { %411 = vrot.lane.b32.xlu0 %v20_v0, %s674_s29  ;;  %413 = vrot.lane.b32.xlu1 %v21_v2, %s674_s29  ;;  %v83_v0 = vsub.s32 0, %v837_v47 }
  0x2a   :  { %415 = vrot.lane.b32.xlu0 %v22_v1, %s674_s29 }
  0x74   :  { %v27_v6 = vpop.permute.xlu0 %26  ;;  %v31_v7 = vpop.permute.xlu1 %30 }
  0x75   :  { %v730_v8 = vsel %vm35_vm0, %v17_v3, %v27_v6  ;;  %v735_v9 = vsel %vm35_vm0, %v19_v5, %v31_v7  ;;  %v861_v3 = vld [vmem:[%s984_s0 + $0x8] sm:$0xff]  ;;  %s678_s0 = smov [#allocation2]  }
  0x76   :  { %42 = vrot.lane.b32.xlu1 %v730_v8, %s675_s30  ;;  %s579_s10 = sshll.u32 %s678_s0, 4  ;;  %s580_s10 = int_to_ptr.vmem [resolvable:$true] %s579_s10 }
  0x77   :  { %s620_s11 = scalar_lea.vmem %s580_s10, 256  ;;  %p625_p1 = scmp.lt.s32.totalorder %s580_s10, %s580_s10 }
  0x78   :  { %v29_v10 = vpop.permute.xlu0 %28  ;;  %v153_v12 = vpop.permute.xlu1 %152  ;;  %p621_p0 = scmp.ne.s32.totalorder %s580_s10, %s620_s11  ;;  %p626_p2 = scmp.lt.s32.totalorder %s620_s11, %s620_s11 }
  0x79   :  { %v738_v11 = vsel %vm35_vm0, %v18_v4, %v29_v10  ;;  %v112_v10 = vrot.slane %v861_v3, %v83_v0 }
  0x7a   :  { %44 = vrot.lane.b32.xlu0 %v738_v11, %s675_s30  ;;  %46 = vrot.lane.b32.xlu1 %v735_v9, %s675_s30  ;;  %p627_p3 = por %p626_p2, %p625_p1 }
  0x7c   :  { %v155_v13 = vpop.permute.xlu0 %154  ;;  %v157_v14 = vpop.permute.xlu1 %156  ;;  %p628_p4 = pnand %p627_p3, %p621_p0 }
  0x7e   :  { %51 = vrot.lane.b32.xlu0 %v730_v8, %s676_s4  ;;  %53 = vrot.lane.b32.xlu1 %v738_v11, %s676_s4 }
  0x80   :  { %v162_v15 = vpop.permute.xlu0 %161  ;;  %v164_v16 = vpop.permute.xlu1 %163 }
  0x81   :  { %v757_v17 = vsel %vm35_vm0, %v153_v12, %v162_v15  ;;  %v760_v18 = vsel %vm35_vm0, %v155_v13, %v164_v16  ;;  %v132_v15 = vrot.slane %v861_v3, %v91_v50 }
  0x82   :  { %55 = vrot.lane.b32.xlu0 %v735_v9, %s676_s4  ;;  %60 = vrot.lane.b32.xlu1 %v730_v8, %s677_s5 }
  0x84   :  { %v166_v19 = vpop.permute.xlu0 %165  ;;  %v278_v22 = vpop.permute.xlu1 %277 }
  0x85   :  { %v767_v20 = vsel %vm35_vm0, %v157_v14, %v166_v19  ;;  %v222_v14 = vsub.s32 5, %v837_v47 }
  0x86   :  { %62 = vrot.lane.b32.xlu0 %v738_v11, %s677_s5  ;;  %64 = vrot.lane.b32.xlu1 %v735_v9, %s677_s5 }
  0x88   :  { %v280_v21 = vpop.permute.xlu0 %279  ;;  %v282_v24 = vpop.permute.xlu1 %281 }
  0x8a   :  { %176 = vrot.lane.b32.xlu0 %v757_v17, %s675_s30  ;;  %178 = vrot.lane.b32.xlu1 %v760_v18, %s675_s30 }
  0x8c   :  { %v287_v23 = vpop.permute.xlu0 %286  ;;  %v289_v27 = vpop.permute.xlu1 %288 }
  0x8d   :  { %v782_v25 = vsel %vm35_vm0, %v278_v22, %v287_v23  ;;  %v792_v29 = vsel %vm35_vm0, %v280_v21, %v289_v27 }
  0x8e   :  { %180 = vrot.lane.b32.xlu0 %v767_v20, %s675_s30  ;;  %185 = vrot.lane.b32.xlu1 %v757_v17, %s676_s4 }
  0x90   :  { %v291_v26 = vpop.permute.xlu0 %290  ;;  %v403_v30 = vpop.permute.xlu1 %402 }
  0x91   :  { %v789_v28 = vsel %vm35_vm0, %v282_v24, %v291_v26  ;;  %v214_v24 = vsub.s32 1, %v837_v47 }
  0x92   :  { %187 = vrot.lane.b32.xlu0 %v760_v18, %s676_s4  ;;  %189 = vrot.lane.b32.xlu1 %v767_v20, %s676_s4 }
  0x94   :  { %v405_v31 = vpop.permute.xlu0 %404  ;;  %v407_v32 = vpop.permute.xlu1 %406 }
  0x96   :  { %194 = vrot.lane.b32.xlu0 %v757_v17, %s677_s5  ;;  %196 = vrot.lane.b32.xlu1 %v760_v18, %s677_s5 }
  0x98   :  { %v412_v33 = vpop.permute.xlu0 %411  ;;  %v414_v34 = vpop.permute.xlu1 %413 }
  0x99   :  { %v811_v35 = vsel %vm35_vm0, %v403_v30, %v412_v33  ;;  %v814_v36 = vsel %vm35_vm0, %v405_v31, %v414_v34 }
  0x9a   :  { %198 = vrot.lane.b32.xlu0 %v767_v20, %s677_s5  ;;  %301 = vrot.lane.b32.xlu1 %v782_v25, %s675_s30 }
  0x9c   :  { %v416_v37 = vpop.permute.xlu0 %415 }
  0x9d   :  { %v821_v38 = vsel %vm35_vm0, %v407_v32, %v416_v37  ;;  %v223_v37 = vrot.slane %v845_v52, %v222_v14 }
  0x9e   :  { %303 = vrot.lane.b32.xlu0 %v792_v29, %s675_s30  ;;  %305 = vrot.lane.b32.xlu1 %v789_v28, %s675_s30 }
  0xa2   :  { %310 = vrot.lane.b32.xlu0 %v782_v25, %s676_s4  ;;  %312 = vrot.lane.b32.xlu1 %v792_v29, %s676_s4 }
  0xa6   :  { %314 = vrot.lane.b32.xlu0 %v789_v28, %s676_s4  ;;  %319 = vrot.lane.b32.xlu1 %v782_v25, %s677_s5 }
  0xaa   :  { %321 = vrot.lane.b32.xlu0 %v792_v29, %s677_s5  ;;  %323 = vrot.lane.b32.xlu1 %v789_v28, %s677_s5 }
  0xae   :  { %426 = vrot.lane.b32.xlu0 %v811_v35, %s675_s30  ;;  %428 = vrot.lane.b32.xlu1 %v814_v36, %s675_s30 }
  0xb2   :  { %430 = vrot.lane.b32.xlu0 %v821_v38, %s675_s30  ;;  %435 = vrot.lane.b32.xlu1 %v811_v35, %s676_s4 }
  0xb6   :  { %437 = vrot.lane.b32.xlu0 %v814_v36, %s676_s4  ;;  %439 = vrot.lane.b32.xlu1 %v821_v38, %s676_s4 }
  0xba   :  { %444 = vrot.lane.b32.xlu0 %v811_v35, %s677_s5  ;;  %446 = vrot.lane.b32.xlu1 %v814_v36, %s677_s5 }
  0xbe   :  { %448 = vrot.lane.b32.xlu0 %v821_v38, %s677_s5 }
  0xe8   :  { %v43_v39 = vpop.permute.xlu1 %42 }
  0xe9   :  { %v70_v56 = vsel %vm69_vm2, %v730_v8, %v43_v39  ;;  %v84_v8 = vrot.slane %v845_v52, %v83_v0 }
  0xec   :  { %v45_v40 = vpop.permute.xlu0 %44  ;;  %v47_v41 = vpop.permute.xlu1 %46 }
  0xed   :  { %v71_v51 = vsel %vm69_vm2, %v738_v11, %v45_v40  ;;  %v72_v63 = vsel %vm69_vm2, %v735_v9, %v47_v41 }
  0xf0   :  { %v52_v42 = vpop.permute.xlu0 %51  ;;  %v54_v43 = vpop.permute.xlu1 %53 }
  0xf1   :  { %v75_v55 = vsel %vm73_vm1, %v71_v51, %v54_v43  ;;  %v74_v58 = vsel %vm73_vm1, %v70_v56, %v52_v42 }
  0xf4   :  { %v56_v45 = vpop.permute.xlu0 %55  ;;  %v61_v46 = vpop.permute.xlu1 %60 }
  0xf5   :  { %v78_v60 = vsel %vm77_vm3, %v74_v58, %v61_v46  ;;  %v76_v2 = vsel %vm73_vm1, %v72_v63, %v56_v45 }
  0xf6   :  { %v93_v4 = vmul.f32 %v92_v59, %v78_v60  ;;  %v85_v21 = vmul.f32 %v84_v8, %v78_v60  ;;  %v113_v22 = vmul.f32 %v112_v10, %v78_v60 }
  0xf8   :  { %v63_v48 = vpop.permute.xlu0 %62  ;;  %v65_v49 = vpop.permute.xlu1 %64  ;;  %v100_v12 = vrot.slane %v93_v4, 1  ;;  %v120_v45 = vrot.slane %v113_v22, 2  ;;  %v339_v22 = vsub.s32 2, %v837_v47 }
  0xf9   :  { %v79_v57 = vsel %vm77_vm3, %v75_v55, %v63_v48  ;;  %v80_v5 = vsel %vm77_vm3, %v76_v2, %v65_v49 }
  0xfa   :  { %v94_v1 = vmul.f32 %v92_v59, %v79_v57  ;;  %v95_v11 = vmul.f32 %v92_v59, %v80_v5  ;;  %v114_v13 = vmul.f32 %v112_v10, %v79_v57  ;;  %v134_v26 = vmul.f32 %v132_v15, %v79_v57 }
  0xfb   :  { %v115_v40 = vmul.f32 %v112_v10, %v80_v5  ;;  %v86_v46 = vmul.f32 %v84_v8, %v79_v57  ;;  %v135_v50 = vmul.f32 %v132_v15, %v80_v5 }
  0xfc   :  { %v177_v53 = vpop.permute.xlu0 %176  ;;  %v179_v54 = vpop.permute.xlu1 %178  ;;  %v101_v9 = vrot.slane %v94_v1, 1  ;;  %v103_v27 = vrot.slane %v95_v11, 1  ;;  %v121_v32 = vrot.slane %v114_v13, 2  ;;  %v141_v48 = vrot.slane %v134_v26, 3 }
  0xfd   :  { %v203_v30 = vsel %vm69_vm2, %v757_v17, %v177_v53  ;;  %v204_v31 = vsel %vm69_vm2, %v760_v18, %v179_v54  ;;  %v133_v17 = vmul.f32 %v132_v15, %v78_v60  ;;  %v215_v18 = vrot.slane %v845_v52, %v214_v24 }
  0xfe   :  { %v102_v23 = vsel %vm99_vm4, %v100_v12, %v101_v9  ;;  %v104_v49 = vsel %vm99_vm4, %v101_v9, %v103_v27  ;;  %v122_v53 = vsel %vm119_vm5, %v120_v45, %v121_v32  ;;  %v123_v58 = vrot.slane %v115_v40, 2 }
  0xff   :  { %v107_v39 = vadd.f32 %v102_v23, %v85_v21  ;;  %v242_v60 = vrot.slane %v861_v3, %v214_v24  ;;  %v140_v0 = vrot.slane %v133_v17, 3  ;;  %v108_v1 = vadd.f32 %v104_v49, %v86_v46 }
 0x100   :  { %v181_v61 = vpop.permute.xlu0 %180  ;;  %v186_v62 = vpop.permute.xlu1 %185  ;;  %v143_v2 = vrot.slane %v135_v50, 3  ;;  %v124_v8 = vsel %vm119_vm5, %v121_v32, %v123_v58  ;;  %v340_v17 = vrot.slane %v845_v52, %v339_v22 }
 0x101   :  { %v206_v33 = vsel %vm73_vm1, %v203_v30, %v186_v62  ;;  %v205_v51 = vsel %vm69_vm2, %v767_v20, %v181_v61  ;;  %v127_v59 = vadd.f32 %v122_v53, %v107_v39  ;;  %v261_v20 = vrot.slane %v861_v3, %v222_v14 }
 0x102   :  { %v142_v61 = vsel %vm139_vm6, %v140_v0, %v141_v48  ;;  %v128_v15 = vadd.f32 %v124_v8, %v108_v1  ;;  %v144_v27 = vsel %vm139_vm6, %v141_v48, %v143_v2 }
 0x103   :  { %v147_v10 = vadd.f32 %v142_v61, %v127_v59 }
 0x104   :  { %v188_v6 = vpop.permute.xlu0 %187  ;;  %v190_v7 = vpop.permute.xlu1 %189 }
 0x105   :  { %v207_v34 = vsel %vm73_vm1, %v204_v31, %v188_v6  ;;  %v208_v54 = vsel %vm73_vm1, %v205_v51, %v190_v7 }
 0x108   :  { %v195_v16 = vpop.permute.xlu0 %194  ;;  %v197_v19 = vpop.permute.xlu1 %196 }
 0x109   :  { %v209_v41 = vsel %vm77_vm3, %v206_v33, %v195_v16  ;;  %v210_v42 = vsel %vm77_vm3, %v207_v34, %v197_v19  ;;  %v347_v16 = vsub.s32 6, %v837_v47 }
 0x10a   :  { %v224_v55 = vmul.f32 %v223_v37, %v209_v41  ;;  %v225_v56 = vmul.f32 %v223_v37, %v210_v42  ;;  %v216_v4 = vmul.f32 %v215_v18, %v209_v41  ;;  %v243_v9 = vmul.f32 %v242_v60, %v209_v41 }
 0x10b   :  { %v244_v11 = vmul.f32 %v242_v60, %v210_v42  ;;  %v262_v21 = vmul.f32 %v261_v20, %v209_v41  ;;  %v217_v14 = vmul.f32 %v215_v18, %v210_v42  ;;  %v263_v24 = vmul.f32 %v261_v20, %v210_v42 }
 0x10c   :  { %v199_v43 = vpop.permute.xlu0 %198  ;;  %v302_v44 = vpop.permute.xlu1 %301  ;;  %v230_v5 = vrot.slane %v224_v55, 1  ;;  %v231_v6 = vrot.slane %v225_v56, 1  ;;  %v218_v19 = vadd.f32 %v216_v4, %v147_v10  ;;  %v249_v30 = vrot.slane %v243_v9, 2 }
 0x10d   :  { %v211_v57 = vsel %vm77_vm3, %v208_v54, %v199_v43  ;;  %v250_v31 = vrot.slane %v244_v11, 2  ;;  %v328_v32 = vsel %vm69_vm2, %v782_v25, %v302_v44  ;;  %v348_v41 = vrot.slane %v845_v52, %v347_v16 }
 0x10e   :  { %v226_v7 = vmul.f32 %v223_v37, %v211_v57  ;;  %v232_v23 = vsel %vm99_vm4, %v230_v5, %v231_v6  ;;  %v148_v37 = vadd.f32 %v144_v27, %v128_v15  ;;  %v245_v39 = vmul.f32 %v242_v60, %v211_v57 }
 0x10f   :  { %v268_v43 = vrot.slane %v262_v21, 3  ;;  %v237_v45 = vadd.f32 %v232_v23, %v218_v19  ;;  %v269_v18 = vrot.slane %v263_v24, 3  ;;  %v251_v44 = vsel %vm119_vm5, %v249_v30, %v250_v31 }
 0x110   :  { %v304_v62 = vpop.permute.xlu0 %303  ;;  %v306_v63 = vpop.permute.xlu1 %305  ;;  %v233_v26 = vrot.slane %v226_v7, 1  ;;  %v219_v46 = vadd.f32 %v217_v14, %v148_v37  ;;  %v264_v49 = vmul.f32 %v261_v20, %v211_v57  ;;  %v252_v55 = vrot.slane %v245_v39, 2 }
 0x111   :  { %v329_v25 = vsel %vm69_vm2, %v792_v29, %v304_v62  ;;  %v330_v50 = vsel %vm69_vm2, %v789_v28, %v306_v63  ;;  %v256_v0 = vadd.f32 %v251_v44, %v237_v45  ;;  %v367_v57 = vrot.slane %v861_v3, %v339_v22 }
 0x112   :  { %v234_v48 = vsel %vm99_vm4, %v231_v6, %v233_v26  ;;  %v271_v62 = vrot.slane %v264_v49, 3  ;;  %v270_v28 = vsel %vm139_vm6, %v268_v43, %v269_v18  ;;  %v253_v61 = vsel %vm119_vm5, %v250_v31, %v252_v55 }
 0x113   :  { %v238_v60 = vadd.f32 %v234_v48, %v219_v46  ;;  %v275_v10 = vadd.f32 %v270_v28, %v256_v0  ;;  %v386_v11 = vrot.slane %v861_v3, %v347_v16  ;;  %v464_v31 = vsub.s32 3, %v837_v47 }
 0x114   :  { %v311_v12 = vpop.permute.xlu0 %310  ;;  %v313_v13 = vpop.permute.xlu1 %312 }
 0x115   :  { %v331_v40 = vsel %vm73_vm1, %v328_v32, %v311_v12  ;;  %v332_v51 = vsel %vm73_vm1, %v329_v25, %v313_v13  ;;  %v257_v8 = vadd.f32 %v253_v61, %v238_v60  ;;  %v272_v13 = vsel %vm139_vm6, %v269_v18, %v271_v62 }
 0x116   :  { %v472_v32 = vsub.s32 7, %v837_v47  ;;  %v465_v18 = vrot.slane %v845_v52, %v464_v31  ;;  %v492_v25 = vrot.slane %v861_v3, %v464_v31 }
 0x117   :  { %v276_v27 = vadd.f32 %v272_v13, %v257_v8 }
 0x118   :  { %v315_v33 = vpop.permute.xlu0 %314  ;;  %v320_v34 = vpop.permute.xlu1 %319  ;;  %v473_v48 = vrot.slane %v845_v52, %v472_v32 }
 0x119   :  { %v334_v42 = vsel %vm77_vm3, %v331_v40, %v320_v34  ;;  %v333_v56 = vsel %vm73_vm1, %v330_v50, %v315_v33  ;;  %v511_v50 = vrot.slane %v861_v3, %v472_v32 }
 0x11a   :  { %v349_v58 = vmul.f32 %v348_v41, %v334_v42  ;;  %v341_v63 = vmul.f32 %v340_v17, %v334_v42  ;;  %v368_v9 = vmul.f32 %v367_v57, %v334_v42  ;;  %v387_v16 = vmul.f32 %v386_v11, %v334_v42 }
 0x11c   :  { %v322_v53 = vpop.permute.xlu0 %321  ;;  %v324_v54 = vpop.permute.xlu1 %323  ;;  %v355_v5 = vrot.slane %v349_v58, 1  ;;  %v343_v15 = vadd.f32 %v341_v63, %v275_v10  ;;  %v374_v33 = vrot.slane %v368_v9, 2  ;;  %v393_v44 = vrot.slane %v387_v16, 3 }
 0x11d   :  { %v335_v59 = vsel %vm77_vm3, %v332_v51, %v322_v53  ;;  %v336_v29 = vsel %vm77_vm3, %v333_v56, %v324_v54 }
 0x11e   :  { %v350_v1 = vmul.f32 %v348_v41, %v335_v59  ;;  %v369_v6 = vmul.f32 %v367_v57, %v335_v59  ;;  %v351_v7 = vmul.f32 %v348_v41, %v336_v29  ;;  %v342_v19 = vmul.f32 %v340_v17, %v335_v59 }
 0x11f   :  { %v388_v23 = vmul.f32 %v386_v11, %v335_v59  ;;  %v370_v26 = vmul.f32 %v367_v57, %v336_v29  ;;  %v389_v37 = vmul.f32 %v386_v11, %v336_v29 }
 0x120   :  { %v356_v2 = vrot.slane %v350_v1, 1  ;;  %v427_v4 = vpop.permute.xlu0 %426  ;;  %v429_v20 = vpop.permute.xlu1 %428  ;;  %v375_v14 = vrot.slane %v369_v6, 2  ;;  %v358_v24 = vrot.slane %v351_v7, 1  ;;  %v344_v34 = vadd.f32 %v342_v19, %v276_v27 }
 0x121   :  { %v394_v43 = vrot.slane %v388_v23, 3  ;;  %v377_v17 = vrot.slane %v370_v26, 2  ;;  %v453_v42 = vsel %vm69_vm2, %v811_v35, %v427_v4  ;;  %v454_v49 = vsel %vm69_vm2, %v814_v36, %v429_v20 }
 0x122   :  { %v357_v12 = vsel %vm99_vm4, %v355_v5, %v356_v2  ;;  %v376_v41 = vsel %vm119_vm5, %v374_v33, %v375_v14  ;;  %v359_v45 = vsel %vm99_vm4, %v356_v2, %v358_v24  ;;  %v396_v53 = vrot.slane %v389_v37, 3 }
 0x123   :  { %v362_v30 = vadd.f32 %v357_v12, %v343_v15  ;;  %v363_v51 = vadd.f32 %v359_v45, %v344_v34  ;;  %v378_v52 = vsel %vm119_vm5, %v375_v14, %v377_v17  ;;  %v395_v59 = vsel %vm139_vm6, %v393_v44, %v394_v43 }
 0x124   :  { %v431_v21 = vpop.permute.xlu0 %430  ;;  %v436_v22 = vpop.permute.xlu1 %435  ;;  %v397_v10 = vsel %vm139_vm6, %v394_v43, %v396_v53 }
 0x125   :  { %v381_v46 = vadd.f32 %v376_v41, %v362_v30  ;;  %v456_v54 = vsel %vm73_vm1, %v453_v42, %v436_v22  ;;  %v382_v63 = vadd.f32 %v378_v52, %v363_v51  ;;  %v455_v2 = vsel %vm69_vm2, %v821_v38, %v431_v21 }
 0x127   :  { %v400_v0 = vadd.f32 %v395_v59, %v381_v46  ;;  %v401_v22 = vadd.f32 %v397_v10, %v382_v63 }
 0x128   :  { %v438_v39 = vpop.permute.xlu0 %437  ;;  %v440_v40 = vpop.permute.xlu1 %439 }
 0x129   :  { %v457_v55 = vsel %vm73_vm1, %v454_v49, %v438_v39  ;;  %v458_v5 = vsel %vm73_vm1, %v455_v2, %v440_v40 }
 0x12c   :  { %v445_v56 = vpop.permute.xlu0 %444  ;;  %v447_v58 = vpop.permute.xlu1 %446 }
 0x12d   :  { %v459_v60 = vsel %vm77_vm3, %v456_v54, %v445_v56  ;;  %v460_v35 = vsel %vm77_vm3, %v457_v55, %v447_v58 }
 0x12e   :  { %v466_v36 = vmul.f32 %v465_v18, %v459_v60  ;;  %v474_v1 = vmul.f32 %v473_v48, %v459_v60  ;;  %v493_v3 = vmul.f32 %v492_v25, %v459_v60  ;;  %v512_v29 = vmul.f32 %v511_v50, %v459_v60 }
 0x12f   :  { %v475_v57 = vmul.f32 %v473_v48, %v460_v35  ;;  %v494_v62 = vmul.f32 %v492_v25, %v460_v35  ;;  %v513_v28 = vmul.f32 %v511_v50, %v460_v35  ;;  %v467_v9 = vmul.f32 %v465_v18, %v460_v35 }
 0x130   :  { %v468_v4 = vadd.f32 %v466_v36, %v400_v0  ;;  %v480_v20 = vrot.slane %v474_v1, 1  ;;  %v449_v61 = vpop.permute.xlu0 %448  ;;  %v499_v6 = vrot.slane %v493_v3, 2  ;;  %v518_v12 = vrot.slane %v512_v29, 3 }
 0x131   :  { %v481_v7 = vrot.slane %v475_v57, 1  ;;  %v500_v8 = vrot.slane %v494_v62, 2  ;;  %v461_v11 = vsel %vm77_vm3, %v458_v5, %v449_v61  ;;  %v519_v15 = vrot.slane %v513_v28, 3 }
 0x132   :  { %v476_v19 = vmul.f32 %v473_v48, %v461_v11  ;;  %v495_v21 = vmul.f32 %v492_v25, %v461_v11  ;;  %v514_v14 = vmul.f32 %v511_v50, %v461_v11  ;;  %v469_v26 = vadd.f32 %v467_v9, %v401_v22 }
 0x133   :  { %v482_v13 = vsel %vm99_vm4, %v480_v20, %v481_v7  ;;  %v501_v23 = vsel %vm119_vm5, %v499_v6, %v500_v8  ;;  %v520_v31 = vsel %vm139_vm6, %v518_v12, %v519_v15 }
 0x134   :  { %v487_v38 = vadd.f32 %v482_v13, %v468_v4  ;;  %v483_v24 = vrot.slane %v476_v19, 1  ;;  %v502_v30 = vrot.slane %v495_v21, 2  ;;  %v521_v33 = vrot.slane %v514_v14, 3 }
 0x136   :  { %v506_v27 = vadd.f32 %v501_v23, %v487_v38  ;;  %v484_v32 = vsel %vm99_vm4, %v481_v7, %v483_v24  ;;  %v503_v37 = vsel %vm119_vm5, %v500_v8, %v502_v30  ;;  %v522_v40 = vsel %vm139_vm6, %v519_v15, %v521_v33 }
 0x137   :  { %v488_v34 = vadd.f32 %v484_v32, %v469_v26 }
 0x138   :  { %v525_v16 = vadd.f32 %v520_v31, %v506_v27 }
 0x139   :  { %v507_v39 = vadd.f32 %v503_v37, %v488_v34 }
 0x13a   :  { %527 = vst [vmem:[#allocation2] sm:$0xff] %v525_v16  ;;  %v529_v41 = vmax.f32 %v525_v16, 0.0 }
 0x13b   :  { %v526_v43 = vadd.f32 %v522_v40, %v507_v39 }
 0x13c   :  { %v531_v17 = vrot.slane %v529_v41, 1  ;;  %v540_v25 = vrot.slane %v529_v41, 2  ;;  %v547_v53 = vrot.slane %v529_v41, 3 }
 0x13d   :  { %v530_v45 = vmax.f32 %v526_v43, 0.0  ;;  %528 = vst [vmem:[#allocation2 + $0x8] sm:$0xff] %v526_v43 }
 0x13f   :  { %v532_v46 = vrot.slane %v530_v45, 1  ;;  %v541_v18 = vrot.slane %v530_v45, 2  ;;  %v548_v44 = vrot.slane %v530_v45, 3 }
 0x141   :  { %v537_v48 = vsel %vm535_vm7, %v532_v46, %v531_v17  ;;  %v536_v42 = vsel %vm535_vm7, %v531_v17, %v532_v46  ;;  %v544_v51 = vsel %vm542_vm8, %v541_v18, %v540_v25  ;;  %v543_v54 = vsel %vm542_vm8, %v540_v25, %v541_v18 }
 0x142   :  { %v539_v49 = vmax.f32 %v530_v45, %v537_v48  ;;  %v538_v50 = vmax.f32 %v529_v41, %v536_v42  ;;  %v551_v58 = vsel %vm549_vm9, %v548_v44, %v547_v53  ;;  %v550_v52 = vsel %vm549_vm9, %v547_v53, %v548_v44 }
 0x144   :  { %v546_v55 = vmax.f32 %v539_v49, %v544_v51  ;;  %v545_v56 = vmax.f32 %v538_v50, %v543_v54 }
 0x146   :  { %v553_v59 = vmax.f32 %v546_v55, %v551_v58  ;;  %v552_v60 = vmax.f32 %v545_v56, %v550_v52 }
 0x147   :  { %631 = shalt.err (!%p628_p4)
}
 0x148   :  { %s632_s14 = scalar_lea.hbm %s986_s2, 256 }
 0x149   :  { %p633_p5 = scmp.ne.s32.totalorder %s986_s2, %s632_s14  ;;  %p636_p6 = scmp.lt.u32.totalorder %s632_s14, %s986_s2 }
 0x14b   :  { %p638_p7 = pnand %p636_p6, %p633_p5 }
 0x14d   :  { %641 = shalt.err (!%p638_p7)
}
 0x14e   :  { %s679_s19 = smov 128   ;;  %s680_s20 = smov 8   ;;  %556 = vrot.lane.b32.xlu0 %v553_v59, %s669_s21  ;;  %554 = vrot.lane.b32.xlu1 %v552_v60, %s669_s21 }
 0x14f   :  { %585 = dma.vmem_to_hbm [thread:$0]  %s580_s10, 256, %s986_s2, [#allocation3], %s679_s19, %s679_s19, %s680_s20  }
 0x150   :  { %s681_s24 = smov [#allocation4]  }
 0x151   :  { %s591_s2 = sshll.u32 %s681_s24, 4  ;;  %s592_s2 = int_to_ptr.vmem [resolvable:$true] %s591_s2 }
 0x152   :  { %562 = vrot.lane.b32.xlu0 %v553_v59, %s671_s27  ;;  %560 = vrot.lane.b32.xlu1 %v552_v60, %s671_s27  ;;  %s642_s21 = scalar_lea.vmem %s592_s2, 256  ;;  %p647_p9 = scmp.lt.s32.totalorder %s592_s2, %s592_s2 }
 0x153   :  { %p643_p8 = scmp.ne.s32.totalorder %s592_s2, %s642_s21  ;;  %p648_p10 = scmp.lt.s32.totalorder %s642_s21, %s642_s21 }
 0x155   :  { %p649_p11 = por %p648_p10, %p647_p9 }
 0x156   :  { %568 = vrot.lane.b32.xlu0 %v553_v59, %s673_s1  ;;  %566 = vrot.lane.b32.xlu1 %v552_v60, %s673_s1 }
 0x157   :  { %p650_p12 = pnand %p649_p11, %p643_p8 }
 0x1c0   :  { %v557_v47 = vpop.permute.xlu0 %556  ;;  %v555_v35 = vpop.permute.xlu1 %554 }
 0x1c1   :  { %v559_v1 = vmax.f32 %v553_v59, %v557_v47  ;;  %v558_v3 = vmax.f32 %v552_v60, %v555_v35 }
 0x1c4   :  { %v563_v0 = vpop.permute.xlu0 %562  ;;  %v561_v36 = vpop.permute.xlu1 %560 }
 0x1c5   :  { %v565_v29 = vmax.f32 %v559_v1, %v563_v0  ;;  %v564_v57 = vmax.f32 %v558_v3, %v561_v36 }
 0x1c8   :  { %v569_v62 = vpop.permute.xlu0 %568  ;;  %v567_v28 = vpop.permute.xlu1 %566 }
 0x1c9   :  { %v571_v63 = vmax.f32 %v565_v29, %v569_v62  ;;  %v570_v2 = vmax.f32 %v564_v57, %v567_v28 }
 0x1cb   :  { %573 = vst [vmem:[#allocation4 + $0x8] sm:$0xff] %v571_v63  ;;  %572 = vst [vmem:[#allocation4] sm:$0xff] %v570_v2 }
 0x1cc   :  { %653 = shalt.err (!%p650_p12)
}
 0x1cd   :  { %s654_s27 = scalar_lea.hbm %s987_s3, 256 }
 0x1ce   :  { %p655_p13 = scmp.ne.s32.totalorder %s987_s3, %s654_s27  ;;  %p658_p0 = scmp.lt.u32.totalorder %s654_s27, %s987_s3 }
 0x1d0   :  { %p660_p1 = pnand %p658_p0, %p655_p13 }
 0x1d2   :  { %663 = shalt.err (!%p660_p1)
}
 0x1d3   :  { %597 = dma.vmem_to_hbm [thread:$0]  %s592_s2, 256, %s987_s3, [#allocation5], %s679_s19, %s679_s19, %s680_s20  }
 0x1d4   :  { %664 = dma.done.wait [#allocation3], 256  }
 0x1d5   :  { %665 = vsyncadd [#allocation3], 4294967040 }
 0x1d6   :  { %666 = dma.done.wait [#allocation5], 256  }
 0x1d7   :  { %667 = vsyncadd [#allocation5], 4294967040 }
 0x1d8   :  { %604 = vsyncpa [#allocation3], 1 }
 0x1d9   :  { %605 = vsyncpa [#allocation5], 1 }

</bundles_post_ra>
